<compile_context>
chip_gen: v7x
topology: tpu7x:2x2x1
jax: 0.10.0
libtpu: 0.0.40
codegen_flags: <defaults>
</compile_context>

<pallas_src>
import functools
from typing import NamedTuple, Optional

import jax
import jax.numpy as jnp
from jax.experimental import pallas as pl
from jax.experimental.pallas import tpu as pltpu

_LANE = 128          # lane width (last dim)
_BF16_SUBLANE = 16   # bf16 packs 16 rows per vreg sublane group
_NEG = -1e30         # padded-logit bias -> exp() underflows to 0 in logsumexp


def _round_up(n: int, m: int) -> int:
    return ((n + m - 1) // m) * m


class PreparedParams(NamedTuple):
    """One-time padded / bf16-cast / stacked parameters."""
    w1: jax.Array                 # (K_pad, H_pad)              bf16
    w_stack: Optional[jax.Array]  # (num_layers-1, H_pad, H_pad) bf16, or None
    wo: jax.Array                 # (H_pad, OUT_pad)            bf16
    bias: jax.Array               # (num_layers+1, Bw)          f32 (last row padded w/ -1e30)


# ----------------------------------------------------------------------------
# Kernel
# ----------------------------------------------------------------------------
def _mlp_kernel(activation, num_layers, h_pad, out_pad, *refs):
    """Fused MLP kernel for one batch tile.

    refs (num_layers > 1):  x, W1, Wstack, Wo, bias, out
    refs (num_layers == 1): x, W1,          Wo, bias, out
    """
    if num_layers > 1:
        x_ref, w1_ref, w_stack_ref, wo_ref, bias_ref, out_ref = refs
    else:
        x_ref, w1_ref, wo_ref, bias_ref, out_ref = refs
        w_stack_ref = None

    if activation == "relu":
        act_fn = lambda v: jnp.maximum(v, 0.0)
    elif activation == "tanh":
        act_fn = jnp.tanh
    elif activation == "sigmoid":
        act_fn = jax.nn.sigmoid
    else:
        raise ValueError(f"unknown activation {activation!r}")

    biases = bias_ref[...]   # (num_layers+1, Bw) f32, tiny
    h = x_ref[...]           # (tile_b, K_pad) bf16

    # Hidden layers: Linear (bf16 MXU, f32 acc) -> activation (f32) -> identity dropout.
    for layer in range(num_layers):
        w = w1_ref[...] if layer == 0 else w_stack_ref[layer - 1]
        b = biases[layer:layer + 1, :h_pad]                       # (1, H_pad) f32
        acc = jnp.dot(h, w, preferred_element_type=jnp.float32) + b
        acc = act_fn(acc)
        h = acc.astype(jnp.bfloat16)   # back to bf16 for next MXU matmul

    # Output layer; padded logit lanes carry bias -1e30 -> ignored by logsumexp.
    bo = biases[num_layers:num_layers + 1, :out_pad]              # (1, OUT_pad) f32
    logits = jnp.dot(h, wo_ref[...], preferred_element_type=jnp.float32) + bo

    # log_softmax along dim=1 (numerically stable, f32)
    m = jnp.max(logits, axis=-1, keepdims=True)
    shifted = logits - m
    lse = jnp.log(jnp.sum(jnp.exp(shifted), axis=-1, keepdims=True))
    out_ref[...] = (shifted - lse).astype(out_ref.dtype)


# ----------------------------------------------------------------------------
# One-time parameter preparation (hoisted out of the forward path)
# ----------------------------------------------------------------------------
def prepare_params(params) -> PreparedParams:
    """Pad feature dims to multiples of 128, cast weights to bf16, stack operands.

    params: dict with 'hidden' = [(W_in_out, b), ...] and 'output' = (W_in_out, b),
            float32, weights stored (in_features, out_features).
    """
    hidden = params["hidden"]
    wo, bo = params["output"]
    num_layers = len(hidden)
    assert num_layers >= 1, "need at least one hidden layer"

    in_features = hidden[0][0].shape[0]
    units = hidden[0][0].shape[1]
    out_size = wo.shape[1]

    k_pad = _round_up(in_features, _LANE)     # 784 -> 896
    h_pad = _round_up(units, _LANE)           # 128 -> 128
    out_pad = _round_up(out_size, _LANE)      # 10  -> 128
    bias_w = max(h_pad, out_pad)

    # First hidden weight (K_pad, H_pad); zero-padded rows/cols -> bit-identical matmul.
    w1_src = hidden[0][0]
    w1 = jnp.zeros((k_pad, h_pad), jnp.bfloat16)
    w1 = w1.at[:in_features, :units].set(w1_src.astype(jnp.bfloat16))

    # Remaining hidden weights stacked: (num_layers-1, H_pad, H_pad).
    if num_layers > 1:
        ws = []
        for (w, _) in hidden[1:]:
            wp = jnp.zeros((h_pad, h_pad), jnp.bfloat16)
            wp = wp.at[:units, :units].set(w.astype(jnp.bfloat16))
            ws.append(wp)
        w_stack = jnp.stack(ws)
    else:
        w_stack = None

    # Output weight (H_pad, OUT_pad).
    wo_p = jnp.zeros((h_pad, out_pad), jnp.bfloat16)
    wo_p = wo_p.at[:units, :out_size].set(wo.astype(jnp.bfloat16))

    # Bias stack (num_layers+1, Bw): hidden rows zero-padded, output row -1e30-padded.
    bias = jnp.zeros((num_layers + 1, bias_w), jnp.float32)
    for i, (_, b) in enumerate(hidden):
        bias = bias.at[i, :units].set(b.astype(jnp.float32))
    bias = bias.at[num_layers, :].set(_NEG)
    bias = bias.at[num_layers, :out_size].set(bo.astype(jnp.float32))

    return PreparedParams(w1=w1, w_stack=w_stack, wo=wo_p, bias=bias)


# ----------------------------------------------------------------------------
# Forward (jitted; single fused pallas_call)
# ----------------------------------------------------------------------------
@functools.partial(jax.jit, static_argnames=("activation", "out_size", "max_tile_b"))
def custom_model_forward(x, prepared: PreparedParams, *, activation, out_size,
                         max_tile_b=512):
    """CustomModel forward. x: (B, ...) flattened to (B, -1) like the PyTorch module."""
    B = x.shape[0]
    x2d = x.reshape(B, -1)
    in_features = x2d.shape[1]

    k_pad = prepared.w1.shape[0]
    h_pad = prepared.wo.shape[0]
    out_pad = prepared.wo.shape[1]
    num_layers = prepared.bias.shape[0] - 1

    # ---- batch tiling: bf16-friendly (mult of 16), big tiles to amortize per-step
    # overhead, and >= 2 grid steps for large B so v7x's 2 TCs both get work. ----
    tile_b = min(max_tile_b, max(_BF16_SUBLANE, _round_up(-(-B // 2), _BF16_SUBLANE)))
    b_pad = _round_up(B, tile_b)
    grid_b = b_pad // tile_b

    # ---- input: single fused pad (cast + zero-pad), no zeros/update round-trip ----
    x_p = jnp.pad(x2d.astype(jnp.bfloat16),
                  ((0, b_pad - B), (0, k_pad - in_features)))

    # ---- operands & specs (weights resident: constant index_map) ----
    operands = [x_p, prepared.w1]
    in_specs = [
        pl.BlockSpec((tile_b, k_pad), lambda i: (i, 0)),
        pl.BlockSpec(prepared.w1.shape, lambda i: (0, 0)),
    ]
    if prepared.w_stack is not None:
        operands.append(prepared.w_stack)
        in_specs.append(pl.BlockSpec(prepared.w_stack.shape, lambda i: (0, 0, 0)))
    operands += [prepared.wo, prepared.bias]
    in_specs += [
        pl.BlockSpec(prepared.wo.shape, lambda i: (0, 0)),
        pl.BlockSpec(prepared.bias.shape, lambda i: (0, 0)),
    ]

    kernel = functools.partial(_mlp_kernel, activation, num_layers, h_pad, out_pad)

    out_padded = pl.pallas_call(
        kernel,
        out_shape=jax.ShapeDtypeStruct((b_pad, out_pad), jnp.float32),
        grid=(grid_b,),
        in_specs=in_specs,
        out_specs=pl.BlockSpec((tile_b, out_pad), lambda i: (i, 0)),
        compiler_params=pltpu.CompilerParams(
            dimension_semantics=("parallel",),
        ),
    )(*operands)

    return out_padded[:B, :out_size]


# ----------------------------------------------------------------------------
# Deterministic parameter init (mimics nn.Linear default: U(-1/sqrt(fan_in), +))
# ----------------------------------------------------------------------------
def init_params(key, num_layers, units_per_layer, input_size, output_size):
    hidden = []
    in_dim = input_size
    for _ in range(num_layers):
        key, kw, kb = jax.random.split(key, 3)
        bound = 1.0 / jnp.sqrt(in_dim)
        w = jax.random.uniform(kw, (in_dim, units_per_layer), jnp.float32, -bound, bound)
        b = jax.random.uniform(kb, (units_per_layer,), jnp.float32, -bound, bound)
        hidden.append((w, b))
        in_dim = units_per_layer
    key, kw, kb = jax.random.split(key, 3)
    bound = 1.0 / jnp.sqrt(in_dim)
    wo = jax.random.uniform(kw, (in_dim, output_size), jnp.float32, -bound, bound)
    bo = jax.random.uniform(kb, (output_size,), jnp.float32, -bound, bound)
    return {"hidden": hidden, "output": (wo, bo)}


# ----------------------------------------------------------------------------
# Pure-JAX references for sanity checking
# ----------------------------------------------------------------------------
def reference_forward_bf16(x, params, activation):
    """Matches the kernel's numerics: bf16 matmul inputs, f32 accumulation/elementwise."""
    act = {"relu": jax.nn.relu, "tanh": jnp.tanh, "sigmoid": jax.nn.sigmoid}[activation]
    h = x.reshape(x.shape[0], -1).astype(jnp.bfloat16)
    for (w, b) in params["hidden"]:
        acc = jnp.dot(h, w.astype(jnp.bfloat16), preferred_element_type=jnp.float32)
        acc = act(acc + b.astype(jnp.float32))
        h = acc.astype(jnp.bfloat16)
    wo, bo = params["output"]
    logits = jnp.dot(h, wo.astype(jnp.bfloat16), preferred_element_type=jnp.float32)
    logits = logits + bo.astype(jnp.float32)
    return jax.nn.log_softmax(logits, axis=1)


def reference_forward_f32(x, params, activation):
    act = {"relu": jax.nn.relu, "tanh": jnp.tanh, "sigmoid": jax.nn.sigmoid}[activation]
    h = x.reshape(x.shape[0], -1).astype(jnp.float32)
    for (w, b) in params["hidden"]:
        h = act(h @ w + b)
    wo, bo = params["output"]
    return jax.nn.log_softmax(h @ wo + bo, axis=1)


if __name__ == "__main__":
    # CustomModel(num_layers=2, units_per_layer=128, activation='relu',
    #             dropout_rate=0.1, input_size=28*28, output_size=10)
    num_layers = 2
    units_per_layer = 128
    activation = "relu"
    input_size = 28 * 28
    output_size = 10
    batch = 8

    key = jax.random.PRNGKey(0)
    key, kx, kp = jax.random.split(key, 3)

    # MNIST-like input: (B, 1, 28, 28) NCHW, flattened inside the model
    x = jax.random.normal(kx, (batch, 1, 28, 28), dtype=jnp.float32)
    params = init_params(kp, num_layers, units_per_layer, input_size, output_size)

    # One-time weight preparation (padding / bf16 cast / stacking), outside the fwd path.
    prepared = prepare_params(params)
    prepared = jax.tree_util.tree_map(jax.block_until_ready, prepared)

    out = custom_model_forward(x, prepared, activation=activation, out_size=output_size)
    out = jax.block_until_ready(out)
    assert out.shape == (batch, output_size)
    assert jnp.all(jnp.isfinite(out)), "non-finite outputs"

    # Exact-path check against a bf16-matmul / f32-accumulate reference.
    ref_bf16 = reference_forward_bf16(x, params, activation)
    assert jnp.allclose(out, ref_bf16, atol=1e-2, rtol=1e-2), "mismatch vs bf16 reference"

    # Loose check against the pure-f32 reference (bf16 weight rounding error only).
    ref_f32 = reference_forward_f32(x, params, activation)
    assert jnp.allclose(out, ref_f32, atol=5e-2, rtol=5e-2), "mismatch vs f32 reference"

    print("KERNEL_OK")
</pallas_src>

<mosaic_0001>
module attributes {stable_mosaic.version = 11 : i64} {
  func.func @_mlp_kernel(%arg0: i32, %arg1: memref<16x896xbf16, #tpu.memory_space<vmem>>, %arg2: memref<896x128xbf16, #tpu.memory_space<vmem>>, %arg3: memref<1x128x128xbf16, #tpu.memory_space<vmem>>, %arg4: memref<128x128xbf16, #tpu.memory_space<vmem>>, %arg5: memref<3x128xf32, #tpu.memory_space<vmem>>, %arg6: memref<16x128xf32, #tpu.memory_space<vmem>>) attributes {dimension_semantics = [#tpu.dimension_semantics<parallel>], iteration_bounds = array<i64: 1>, scalar_prefetch = 0 : i64, scratch_operands = 0 : i64, tpu.core_type = #tpu.core_type<tc>, window_params = [{transform_indices = @transform_0, window_bounds = array<i64: 16, 896>}, {pipeline_mode = #tpu.pipeline_mode<synchronous>, transform_indices = @transform_1, window_bounds = array<i64: 896, 128>}, {pipeline_mode = #tpu.pipeline_mode<synchronous>, transform_indices = @transform_2, window_bounds = array<i64: 1, 128, 128>}, {pipeline_mode = #tpu.pipeline_mode<synchronous>, transform_indices = @transform_3, window_bounds = array<i64: 128, 128>}, {pipeline_mode = #tpu.pipeline_mode<synchronous>, transform_indices = @transform_4, window_bounds = array<i64: 3, 128>}, {transform_indices = @transform_5, window_bounds = array<i64: 16, 128>}]} {
    %c0 = arith.constant 0 : index
    %c0_0 = arith.constant 0 : index
    %0 = vector.load %arg5[%c0, %c0_0] : memref<3x128xf32, #tpu.memory_space<vmem>>, vector<3x128xf32>
    %c0_1 = arith.constant 0 : index
    %c0_2 = arith.constant 0 : index
    %1 = vector.load %arg1[%c0_1, %c0_2] : memref<16x896xbf16, #tpu.memory_space<vmem>>, vector<16x896xbf16>
    %c0_3 = arith.constant 0 : index
    %c0_4 = arith.constant 0 : index
    %2 = vector.load %arg2[%c0_3, %c0_4] : memref<896x128xbf16, #tpu.memory_space<vmem>>, vector<896x128xbf16>
    %3 = vector.extract_strided_slice %0 {offsets = [0, 0], sizes = [1, 128], strides = [1, 1]} : vector<3x128xf32> to vector<1x128xf32>
    %cst = arith.constant dense<0.000000e+00> : vector<16x128xf32>
    %4 = tpu.matmul %1, %2, %cst {dimension_numbers = #tpu.dot_dimension_numbers<[1], [0], [0], [1], [0, 0, 1, 1], [], []>} : vector<16x896xbf16>, vector<896x128xbf16>, vector<16x128xf32> -> vector<16x128xf32>
    %5 = vector.broadcast %3 : vector<1x128xf32> to vector<16x128xf32>
    %6 = arith.addf %4, %5 : vector<16x128xf32>
    %cst_5 = arith.constant 0.000000e+00 : f32
    %7 = vector.broadcast %cst_5 : f32 to vector<16x128xf32>
    %8 = arith.maximumf %6, %7 : vector<16x128xf32>
    %9 = arith.truncf %8 : vector<16x128xf32> to vector<16x128xbf16>
    %c0_6 = arith.constant 0 : index
    %c0_7 = arith.constant 0 : index
    %c0_8 = arith.constant 0 : index
    %10 = vector.load %arg3[%c0_6, %c0_7, %c0_8] : memref<1x128x128xbf16, #tpu.memory_space<vmem>>, vector<1x128x128xbf16>
    %11 = vector.shape_cast %10 : vector<1x128x128xbf16> to vector<128x128xbf16>
    %12 = vector.extract_strided_slice %0 {offsets = [1, 0], sizes = [1, 128], strides = [1, 1]} : vector<3x128xf32> to vector<1x128xf32>
    %cst_9 = arith.constant dense<0.000000e+00> : vector<16x128xf32>
    %13 = tpu.matmul %9, %11, %cst_9 {dimension_numbers = #tpu.dot_dimension_numbers<[1], [0], [0], [1], [0, 0, 1, 1], [], []>} : vector<16x128xbf16>, vector<128x128xbf16>, vector<16x128xf32> -> vector<16x128xf32>
    %14 = vector.broadcast %12 : vector<1x128xf32> to vector<16x128xf32>
    %15 = arith.addf %13, %14 : vector<16x128xf32>
    %cst_10 = arith.constant 0.000000e+00 : f32
    %16 = vector.broadcast %cst_10 : f32 to vector<16x128xf32>
    %17 = arith.maximumf %15, %16 : vector<16x128xf32>
    %18 = arith.truncf %17 : vector<16x128xf32> to vector<16x128xbf16>
    %19 = vector.extract_strided_slice %0 {offsets = [2, 0], sizes = [1, 128], strides = [1, 1]} : vector<3x128xf32> to vector<1x128xf32>
    %c0_11 = arith.constant 0 : index
    %c0_12 = arith.constant 0 : index
    %20 = vector.load %arg4[%c0_11, %c0_12] : memref<128x128xbf16, #tpu.memory_space<vmem>>, vector<128x128xbf16>
    %cst_13 = arith.constant dense<0.000000e+00> : vector<16x128xf32>
    %21 = tpu.matmul %18, %20, %cst_13 {dimension_numbers = #tpu.dot_dimension_numbers<[1], [0], [0], [1], [0, 0, 1, 1], [], []>} : vector<16x128xbf16>, vector<128x128xbf16>, vector<16x128xf32> -> vector<16x128xf32>
    %22 = vector.broadcast %19 : vector<1x128xf32> to vector<16x128xf32>
    %23 = arith.addf %21, %22 : vector<16x128xf32>
    %cst_14 = arith.constant dense<0xFF800000> : vector<16xf32>
    %24 = vector.multi_reduction <maximumf>, %23, %cst_14 [1] : vector<16x128xf32> to vector<16xf32>
    %25 = vector.shape_cast %24 : vector<16xf32> to vector<16x1xf32>
    %26 = vector.broadcast %25 : vector<16x1xf32> to vector<16x128xf32>
    %27 = arith.subf %23, %26 : vector<16x128xf32>
    %28 = math.exp %27 : vector<16x128xf32>
    %cst_15 = arith.constant dense<0.000000e+00> : vector<16xf32>
    %29 = vector.multi_reduction <add>, %28, %cst_15 [1] : vector<16x128xf32> to vector<16xf32>
    %30 = vector.shape_cast %29 : vector<16xf32> to vector<16x1xf32>
    %31 = math.log %30 : vector<16x1xf32>
    %32 = vector.broadcast %31 : vector<16x1xf32> to vector<16x128xf32>
    %33 = arith.subf %27, %32 : vector<16x128xf32>
    %c0_16 = arith.constant 0 : index
    %c0_17 = arith.constant 0 : index
    %34 = vector.load %arg6[%c0_16, %c0_17] : memref<16x128xf32, #tpu.memory_space<vmem>>, vector<16x128xf32>
    tpu.vector_store %arg6[%c0_16, %c0_17], %33 {strides = array<i32>} : memref<16x128xf32, #tpu.memory_space<vmem>>, vector<16x128xf32>,
    return
  }
  func.func @transform_0(%arg0: i32) -> (i32, i32) {
    %c0_i32 = arith.constant 0 : i32
    %c0_i32_0 = arith.constant 0 : i32
    return %arg0, %c0_i32 : i32, i32
  }
  func.func @transform_1(%arg0: i32) -> (i32, i32) {
    %c0_i32 = arith.constant 0 : i32
    %c0_i32_0 = arith.constant 0 : i32
    %c0_i32_1 = arith.constant 0 : i32
    return %c0_i32, %c0_i32_0 : i32, i32
  }
  func.func @transform_2(%arg0: i32) -> (i32, i32, i32) {
    %c0_i32 = arith.constant 0 : i32
    %c0_i32_0 = arith.constant 0 : i32
    %c0_i32_1 = arith.constant 0 : i32
    %c0_i32_2 = arith.constant 0 : i32
    return %c0_i32, %c0_i32_0, %c0_i32_1 : i32, i32, i32
  }
  func.func @transform_3(%arg0: i32) -> (i32, i32) {
    %c0_i32 = arith.constant 0 : i32
    %c0_i32_0 = arith.constant 0 : i32
    %c0_i32_1 = arith.constant 0 : i32
    return %c0_i32, %c0_i32_0 : i32, i32
  }
  func.func @transform_4(%arg0: i32) -> (i32, i32) {
    %c0_i32 = arith.constant 0 : i32
    %c0_i32_0 = arith.constant 0 : i32
    %c0_i32_1 = arith.constant 0 : i32
    return %c0_i32, %c0_i32_0 : i32, i32
  }
  func.func @transform_5(%arg0: i32) -> (i32, i32) {
    %c0_i32 = arith.constant 0 : i32
    %c0_i32_0 = arith.constant 0 : i32
    return %arg0, %c0_i32 : i32, i32
  }
}

</mosaic_0001>

<bundles_post_ra>
// kernel: custom_model_forward.1
= control target key start
LH: loop header
LB: loop body
LE: loop exit
PB: predicated region body
PF: predicated region fallthrough
CT: control target
= control target key end

     0   :  { %v1256_v38 = vmov 0.0   ;;  %vm1257_vm0 = vmmov 0   ;;  %s1564_s1 = inlined_call_operand.vmem [shape: bf16[896,128], index: 1, kind: input, shape index: {}]   ;;  %s1565_s0 = inlined_call_operand.vmem [shape: bf16[16,896], index: 0, kind: input, shape index: {}]   ;;  %s1566_s2 = inlined_call_operand.vmem [shape: bf16[1,128,128], index: 2, kind: input, shape index: {}]   ;;  %s1567_s3 = inlined_call_operand.vmem [shape: bf16[128,128], index: 3, kind: input, shape index: {}]   ;;  %s1568_s4 = inlined_call_operand.vmem [shape: f32[3,128], index: 4, kind: input, shape index: {}]   ;;  %s1569_s5 = inlined_call_operand.vmem [shape: f32[16,128], index: 5, kind: output, shape index: {}]  }
   0x1   :  { %v1166_v0 = vld [vmem:[%s1564_s1 + $0x40] sm:$0xff]   ;;  %v1170_v4 = vld [vmem:[%s1564_s1 + $0x48] sm:$0xff]   ;;  %v1174_v8 = vld [vmem:[%s1564_s1 + $0x50] sm:$0xff]  }
   0x2   :  { %v1167_v1 = vld [vmem:[%s1564_s1] sm:$0xff]   ;;  %1011 = vmatprep.subr.bf16.mxu0 %v1166_v0  ;;  %v1171_v5 = vld [vmem:[%s1564_s1 + $0x8] sm:$0xff]   ;;  %v1175_v9 = vld [vmem:[%s1564_s1 + $0x10] sm:$0xff]  }
   0x3   :  { %v1168_v2 = vld [vmem:[%s1564_s1 + $0xc0] sm:$0xff]   ;;  %1012 = vmatpush3.bf16.msra.mxu0 %v1167_v1  ;;  %v1172_v6 = vld [vmem:[%s1564_s1 + $0xc8] sm:$0xff]   ;;  %v1176_v10 = vld [vmem:[%s1564_s1 + $0xd0] sm:$0xff]  }
   0x4   :  { %v1169_v3 = vld [vmem:[%s1564_s1 + $0x80] sm:$0xff]   ;;  %1033 = vmatprep.subr.bf16.mxu1 %v1168_v2  ;;  %1013 = vmatprep.subr.bf16.mxu0 %v1170_v4  ;;  %v1173_v7 = vld [vmem:[%s1564_s1 + $0x88] sm:$0xff]   ;;  %v1177_v11 = vld [vmem:[%s1564_s1 + $0x90] sm:$0xff]  }
   0x5   :  { %1034 = vmatpush3.bf16.msra.mxu1 %v1169_v3  ;;  %v1178_v12 = vld [vmem:[%s1564_s1 + $0x58] sm:$0xff]   ;;  %v1182_v16 = vld [vmem:[%s1564_s1 + $0x60] sm:$0xff]   ;;  %v1186_v20 = vld [vmem:[%s1564_s1 + $0x68] sm:$0xff]  }
   0x6   :  { %1035 = vmatprep.subr.bf16.mxu1 %v1172_v6  ;;  %v1179_v13 = vld [vmem:[%s1564_s1 + $0x18] sm:$0xff]   ;;  %v1183_v17 = vld [vmem:[%s1564_s1 + $0x20] sm:$0xff]   ;;  %v1187_v21 = vld [vmem:[%s1564_s1 + $0x28] sm:$0xff]  }
   0x7   :  { %1014 = vmatpush3.bf16.msra.mxu0 %v1171_v5  ;;  %v1180_v14 = vld [vmem:[%s1564_s1 + $0xd8] sm:$0xff]   ;;  %v1184_v18 = vld [vmem:[%s1564_s1 + $0xe0] sm:$0xff]   ;;  %v1188_v22 = vld [vmem:[%s1564_s1 + $0xe8] sm:$0xff]  }
   0x8   :  { %1015 = vmatprep.subr.bf16.mxu0 %v1174_v8  ;;  %v1181_v15 = vld [vmem:[%s1564_s1 + $0x98] sm:$0xff]   ;;  %v1185_v19 = vld [vmem:[%s1564_s1 + $0xa0] sm:$0xff]   ;;  %v1189_v23 = vld [vmem:[%s1564_s1 + $0xa8] sm:$0xff]  }
   0x9   :  { %1036 = vmatpush3.bf16.msra.mxu1 %v1173_v7  ;;  %v1190_v24 = vld [vmem:[%s1564_s1 + $0x70] sm:$0xff]   ;;  %v1194_v28 = vld [vmem:[%s1564_s1 + $0x78] sm:$0xff]   ;;  %v1199_v32 = vld [vmem:[%s1565_s0 + $0x4] ss:$28 sps:$4 sm:$0xff]  }
   0xa   :  { %1037 = vmatprep.subr.bf16.mxu1 %v1176_v10  ;;  %v1191_v25 = vld [vmem:[%s1564_s1 + $0x30] sm:$0xff]   ;;  %v1195_v29 = vld [vmem:[%s1564_s1 + $0x38] sm:$0xff]   ;;  %550 = vmatprep.mubr.bf16.mxu0 %v1199_v32  ;;  %v1201_v34 = vld [vmem:[%s1564_s1 + $0x140] sm:$0xff]  }
   0xb   :  { %1016 = vmatpush3.bf16.msra.mxu0 %v1175_v9  ;;  %v1192_v26 = vld [vmem:[%s1564_s1 + $0xf0] sm:$0xff]   ;;  %v1196_v30 = vld [vmem:[%s1564_s1 + $0xf8] sm:$0xff]   ;;  %v1202_v35 = vld [vmem:[%s1565_s0 + $0x8] ss:$28 sps:$4 sm:$0xff]  }
   0xc   :  { %1017 = vmatprep.subr.bf16.mxu0 %v1178_v12  ;;  %v1193_v27 = vld [vmem:[%s1564_s1 + $0xb0] sm:$0xff]   ;;  %v1197_v31 = vld [vmem:[%s1565_s0] ss:$28 sps:$4 sm:$0xff]   ;;  %v1204_v36 = vld [vmem:[%s1565_s0 + $0xc] ss:$28 sps:$4 sm:$0xff]  }
   0xd   :  { %1038 = vmatpush3.bf16.msra.mxu1 %v1177_v11  ;;  %v1200_v33 = vld [vmem:[%s1564_s1 + $0xb8] sm:$0xff]   ;;  %v1205_v37 = vld [vmem:[%s1564_s1 + $0x100] sm:$0xff]   ;;  %591 = vmatprep.mubr.bf16.mxu1 %v1204_v36  ;;  %v1207_v40 = vld [vmem:[%s1564_s1 + $0x148] sm:$0xff]  }
   0xe   :  { %1039 = vmatprep.subr.bf16.mxu1 %v1180_v14  ;;  %v1206_v39 = vld [vmem:[%s1564_s1 + $0x180] sm:$0xff]   ;;  %v1208_v41 = vld [vmem:[%s1564_s1 + $0x108] sm:$0xff]   ;;  %v1210_v43 = vld [vmem:[%s1564_s1 + $0x150] sm:$0xff]   ;;  %v142_v14 = vlaneseq }
   0xf   :  { %1018 = vmatpush3.bf16.msra.mxu0 %v1179_v13  ;;  %v1209_v42 = vld [vmem:[%s1564_s1 + $0x188] sm:$0xff]   ;;  %v1211_v44 = vld [vmem:[%s1564_s1 + $0x110] sm:$0xff]   ;;  %v1213_v46 = vld [vmem:[%s1564_s1 + $0x158] sm:$0xff]  }
  0x10   :  { %1019 = vmatprep.subr.bf16.mxu0 %v1182_v16  ;;  %v1212_v45 = vld [vmem:[%s1564_s1 + $0x190] sm:$0xff]   ;;  %v1214_v47 = vld [vmem:[%s1564_s1 + $0x118] sm:$0xff]   ;;  %v1216_v49 = vld [vmem:[%s1564_s1 + $0x160] sm:$0xff]  }
  0x11   :  { %1040 = vmatpush3.bf16.msra.mxu1 %v1181_v15  ;;  %v1215_v48 = vld [vmem:[%s1564_s1 + $0x198] sm:$0xff]   ;;  %v1217_v50 = vld [vmem:[%s1564_s1 + $0x120] sm:$0xff]   ;;  %v1219_v52 = vld [vmem:[%s1564_s1 + $0x168] sm:$0xff]   ;;  %v143_v15 = vshrl.u32 %v142_v14, 7 }
  0x12   :  { %1041 = vmatprep.subr.bf16.mxu1 %v1184_v18  ;;  %v1218_v51 = vld [vmem:[%s1564_s1 + $0x1a0] sm:$0xff]   ;;  %v1220_v53 = vld [vmem:[%s1564_s1 + $0x128] sm:$0xff]   ;;  %v1222_v55 = vld [vmem:[%s1564_s1 + $0x170] sm:$0xff]  }
  0x13   :  { %1020 = vmatpush3.bf16.msra.mxu0 %v1183_v17  ;;  %v1221_v54 = vld [vmem:[%s1564_s1 + $0x1a8] sm:$0xff]   ;;  %v1223_v56 = vld [vmem:[%s1564_s1 + $0x130] sm:$0xff]   ;;  %v1225_v59 = vld [vmem:[%s1564_s1 + $0x178] sm:$0xff]   ;;  %v144_v16 = vsub.s32 0, %v143_v15 }
  0x14   :  { %1021 = vmatprep.subr.bf16.mxu0 %v1186_v20  ;;  %v1224_v57 = vld [vmem:[%s1564_s1 + $0x1b0] sm:$0xff]   ;;  %v1226_v60 = vld [vmem:[%s1564_s1 + $0x138] sm:$0xff]   ;;  %v1232_v0 = vld [vmem:[%s1566_s2] sm:$0xff]  }
  0x15   :  { %1042 = vmatpush3.bf16.msra.mxu1 %v1185_v19  ;;  %v1229_v58 = vld [vmem:[%s1565_s0 + $0x14] ss:$28 sps:$4 sm:$0xff]   ;;  %v1230_v61 = vld [vmem:[%s1564_s1 + $0x1b8] sm:$0xff]   ;;  %v1233_v1 = vld [vmem:[%s1566_s2 + $0x8] sm:$0xff]  }
  0x16   :  { %1043 = vmatprep.subr.bf16.mxu1 %v1188_v22  ;;  %v1227_v62 = vld [vmem:[%s1565_s0 + $0x10] ss:$28 sps:$4 sm:$0xff]   ;;  %v1231_v63 = vld [vmem:[%s1565_s0 + $0x18] ss:$28 sps:$4 sm:$0xff]   ;;  %v1236_v4 = vld [vmem:[%s1566_s2 + $0x20] sm:$0xff]  }
  0x17   :  { %1022 = vmatpush3.bf16.msra.mxu0 %v1187_v21  ;;  %v1234_v2 = vld [vmem:[%s1566_s2 + $0x10] sm:$0xff]   ;;  %v1235_v3 = vld [vmem:[%s1566_s2 + $0x18] sm:$0xff]   ;;  %v1237_v5 = vld [vmem:[%s1566_s2 + $0x28] sm:$0xff]  }
  0x18   :  { %1023 = vmatprep.subr.bf16.mxu0 %v1190_v24  ;;  %v1238_v6 = vld [vmem:[%s1566_s2 + $0x30] sm:$0xff]   ;;  %v1239_v7 = vld [vmem:[%s1566_s2 + $0x38] sm:$0xff]   ;;  %v1240_v8 = vld [vmem:[%s1567_s3] sm:$0xff]  }
  0x19   :  { %1044 = vmatpush3.bf16.msra.mxu1 %v1189_v23  ;;  %v1241_v9 = vld [vmem:[%s1567_s3 + $0x8] sm:$0xff]   ;;  %v1242_v10 = vld [vmem:[%s1567_s3 + $0x10] sm:$0xff]   ;;  %v1243_v11 = vld [vmem:[%s1567_s3 + $0x18] sm:$0xff]  }
  0x1a   :  { %1045 = vmatprep.subr.bf16.mxu1 %v1192_v26  ;;  %v1244_v12 = vld [vmem:[%s1567_s3 + $0x20] sm:$0xff]   ;;  %v1245_v13 = vld [vmem:[%s1567_s3 + $0x28] sm:$0xff]  }
  0x1b   :  { %1024 = vmatpush3.bf16.msra.mxu0 %v1191_v25  ;;  %v21_v17 = vld [vmem:[%s1568_s4] sm:$0x7] }
  0x1c   :  { %1025 = vmatprep.subr.bf16.mxu0 %v1194_v28  ;;  %v145_v19 = vrot.slane %v21_v17, %v144_v16 }
  0x1d   :  { %1046 = vmatpush3.bf16.msra.mxu1 %v1193_v27 }
  0x1e   :  { %1047 = vmatprep.subr.bf16.mxu1 %v1196_v30 }
  0x1f   :  { %1026 = vmatpush3.bf16.msra.mxu0 %v1195_v29 }
  0x20   :  { %1055 = vmatprep.subr.bf16.mxu0 %v1201_v34 }
  0x21   :  { %1048 = vmatpush3.bf16.msra.mxu1 %v1200_v33 }
  0x22   :  { %551 = vmatmul.mubr.bf16.vlgmr.msra.gmra.mrb[0].mxu0 %v1197_v31  ;;  %1104 = vmatprep.subr.bf16.mxu1 %v1256_v38 }
  0x23   :  { %1056 = vmatpush3.bf16.msra.mxu0 %v1205_v37  ;;  %632 = vmatprep.mubr.bf16.mxu0 %v1229_v58 }
  0x24   :  { %592 = vmatmul.mubr.bf16.vlgmr.msra.gmra.mrb[0].mxu1 %v1202_v35  ;;  %1057 = vmatprep.subr.bf16.mxu0 %v1207_v40 }
  0x25   :  { %1105 = vmatpush3.bf16.msra.mxu1 %v1206_v39  ;;  %1120 = vmatprep.mubr.msk.bf16.mxu1 %vm1257_vm0, %v1256_v38 }
  0x26   :  { %1106 = vmatprep.subr.bf16.mxu1 %v1256_v38 }
  0x27   :  { %1058 = vmatpush3.bf16.msra.mxu0 %v1208_v41 }
  0x28   :  { %1059 = vmatprep.subr.bf16.mxu0 %v1210_v43 }
  0x29   :  { %1107 = vmatpush3.bf16.msra.mxu1 %v1209_v42 }
  0x2a   :  { %1108 = vmatprep.subr.bf16.mxu1 %v1256_v38 }
  0x2b   :  { %1060 = vmatpush3.bf16.msra.mxu0 %v1211_v44 }
  0x2c   :  { %1061 = vmatprep.subr.bf16.mxu0 %v1213_v46 }
  0x2d   :  { %1109 = vmatpush3.bf16.msra.mxu1 %v1212_v45 }
  0x2e   :  { %1110 = vmatprep.subr.bf16.mxu1 %v1256_v38 }
  0x2f   :  { %1062 = vmatpush3.bf16.msra.mxu0 %v1214_v47 }
  0x30   :  { %1063 = vmatprep.subr.bf16.mxu0 %v1216_v49 }
  0x31   :  { %1111 = vmatpush3.bf16.msra.mxu1 %v1215_v48 }
  0x32   :  { %1112 = vmatprep.subr.bf16.mxu1 %v1256_v38 }
  0x33   :  { %1064 = vmatpush3.bf16.msra.mxu0 %v1217_v50 }
  0x34   :  { %1065 = vmatprep.subr.bf16.mxu0 %v1219_v52 }
  0x35   :  { %1113 = vmatpush3.bf16.msra.mxu1 %v1218_v51 }
  0x36   :  { %1114 = vmatprep.subr.bf16.mxu1 %v1256_v38 }
  0x37   :  { %1066 = vmatpush3.bf16.msra.mxu0 %v1220_v53  ;;  %v1246_v53 = vld [vmem:[%s1567_s3 + $0x30] sm:$0xff]  }
  0x38   :  { %1067 = vmatprep.subr.bf16.mxu0 %v1222_v55  ;;  %v703_v55 = vsub.s32 1, %v143_v15 }
  0x39   :  { %1115 = vmatpush3.bf16.msra.mxu1 %v1221_v54  ;;  %v1247_v54 = vld [vmem:[%s1567_s3 + $0x38] sm:$0xff]  }
  0x3a   :  { %1116 = vmatprep.subr.bf16.mxu1 %v1256_v38 }
  0x3b   :  { %1068 = vmatpush3.bf16.msra.mxu0 %v1223_v56  ;;  %v704_v56 = vrot.slane %v21_v17, %v703_v55 }
  0x3c   :  { %1069 = vmatprep.subr.bf16.mxu0 %v1225_v59 }
  0x3d   :  { %1117 = vmatpush3.bf16.msra.mxu1 %v1224_v57 }
  0x3e   :  { %1118 = vmatprep.subr.bf16.mxu1 %v1256_v38 }
  0x3f   :  { %1070 = vmatpush3.bf16.msra.mxu0 %v1226_v60 }
  0x40   :  { %1124 = vmatprep.subr.bf16.mxu0 %v1256_v38 }
  0x41   :  { %1119 = vmatpush3.bf16.msra.mxu1 %v1230_v61 }
  0x42   :  { %1144 = vmatprep.subr.bf16.mxu1 %v1256_v38  ;;  %633 = vmatmul.mubr.bf16.vlgmr.msra.gmra.mrb[4].mxu0 %v1227_v62 }
  0x43   :  { %1140 = vmatprep.mubr.msk.bf16.mxu0 %vm1257_vm0, %v1256_v38  ;;  %1125 = vmatpush3.bf16.msra.mxu0 %v1232_v0 }
  0x44   :  { %1121 = vmatmul.mubr.bf16.vlgmr.msra.gmra.mrb[4].mxu1 %v1231_v63  ;;  %1126 = vmatprep.subr.bf16.mxu0 %v1256_v38 }
  0x45   :  { %1160 = vmatprep.mubr.msk.bf16.mxu1 %vm1257_vm0, %v1256_v38  ;;  %1145 = vmatpush3.bf16.msra.mxu1 %v1240_v8 }
  0x46   :  { %1146 = vmatprep.subr.bf16.mxu1 %v1256_v38 }
  0x47   :  { %1127 = vmatpush3.bf16.msra.mxu0 %v1233_v1 }
  0x48   :  { %1128 = vmatprep.subr.bf16.mxu0 %v1256_v38 }
  0x49   :  { %1147 = vmatpush3.bf16.msra.mxu1 %v1241_v9 }
  0x4a   :  { %1148 = vmatprep.subr.bf16.mxu1 %v1256_v38 }
  0x4b   :  { %1129 = vmatpush3.bf16.msra.mxu0 %v1234_v2  ;;  %v815_v2 = vsub.s32 2, %v143_v15 }
  0x4c   :  { %1130 = vmatprep.subr.bf16.mxu0 %v1256_v38 }
  0x4d   :  { %1149 = vmatpush3.bf16.msra.mxu1 %v1242_v10 }
  0x4e   :  { %1150 = vmatprep.subr.bf16.mxu1 %v1256_v38 }
  0x4f   :  { %1131 = vmatpush3.bf16.msra.mxu0 %v1235_v3  ;;  %v816_v3 = vrot.slane %v21_v17, %v815_v2 }
  0x50   :  { %1132 = vmatprep.subr.bf16.mxu0 %v1256_v38 }
  0x51   :  { %1151 = vmatpush3.bf16.msra.mxu1 %v1243_v11 }
  0x52   :  { %1152 = vmatprep.subr.bf16.mxu1 %v1256_v38 }
  0x53   :  { %1133 = vmatpush3.bf16.msra.mxu0 %v1236_v4 }
  0x54   :  { %1134 = vmatprep.subr.bf16.mxu0 %v1256_v38 }
  0x55   :  { %1153 = vmatpush3.bf16.msra.mxu1 %v1244_v12 }
  0x56   :  { %1154 = vmatprep.subr.bf16.mxu1 %v1256_v38 }
  0x57   :  { %1135 = vmatpush3.bf16.msra.mxu0 %v1237_v5 }
  0x58   :  { %1136 = vmatprep.subr.bf16.mxu0 %v1256_v38 }
  0x59   :  { %1155 = vmatpush3.bf16.msra.mxu1 %v1245_v13 }
  0x5a   :  { %1156 = vmatprep.subr.bf16.mxu1 %v1256_v38 }
  0x5b   :  { %1137 = vmatpush3.bf16.msra.mxu0 %v1238_v6 }
  0x5c   :  { %1138 = vmatprep.subr.bf16.mxu0 %v1256_v38 }
  0x5d   :  { %1157 = vmatpush3.bf16.msra.mxu1 %v1246_v53 }
  0x5e   :  { %1158 = vmatprep.subr.bf16.mxu1 %v1256_v38 }
  0x5f   :  { %1139 = vmatpush3.bf16.msra.mxu0 %v1239_v7 }
  0x61   :  { %1159 = vmatpush3.bf16.msra.mxu1 %v1247_v54 }
  0xf5   :  { %v1027_v18 = vpop.f32.mrb[0].mxu0 }
  0xf6   :  { %v1028_v20 = vpop.f32.mrb[1].mxu0 }
  0xf7   :  { %v1029_v21 = vadd.f32 %v1028_v20, %v1027_v18  ;;  %v1030_v22 = vpop.f32.mrb[2].mxu0  ;;  %v1049_v23 = vpop.f32.mrb[0].mxu1 }
  0xf8   :  { %v1031_v24 = vpop.f32.mrb[3].mxu0  ;;  %v1050_v27 = vpop.f32.mrb[1].mxu1 }
  0xf9   :  { %v553_v25 = vadd.f32 %v1029_v21, %v145_v19  ;;  %v1032_v26 = vadd.f32 %v1031_v24, %v1030_v22  ;;  %v1051_v28 = vadd.f32 %v1050_v27, %v1049_v23  ;;  %v1052_v29 = vpop.f32.mrb[2].mxu1 }
  0xfa   :  { %v1053_v31 = vpop.f32.mrb[3].mxu1 }
  0xfb   :  { %v556_v30 = vadd.f32 %v1032_v26, %v145_v19  ;;  %v594_v32 = vadd.f32 %v1051_v28, %v553_v25  ;;  %v1054_v33 = vadd.f32 %v1053_v31, %v1052_v29 }
  0xfd   :  { %v597_v34 = vadd.f32 %v1054_v33, %v556_v30 }
 0x115   :  { %v1071_v35 = vpop.f32.mrb[4].mxu0 }
 0x116   :  { %v1072_v36 = vpop.f32.mrb[5].mxu0 }
 0x117   :  { %v675_v37 = vpop.f32.mrb[4].mxu1  ;;  %v1073_v39 = vadd.f32 %v1072_v36, %v1071_v35  ;;  %v1074_v40 = vpop.f32.mrb[6].mxu0 }
 0x118   :  { %v1122_v41 = vpop.f32.mrb[5].mxu1  ;;  %v1075_v42 = vpop.f32.mrb[7].mxu0 }
 0x119   :  { %v678_v43 = vpop.f32.mrb[6].mxu1  ;;  %v635_v44 = vadd.f32 %v1073_v39, %v594_v32  ;;  %v1076_v45 = vadd.f32 %v1075_v42, %v1074_v40 }
 0x11a   :  { %v1123_v46 = vpop.f32.mrb[7].mxu1 }
 0x11b   :  { %v676_v47 = vadd.f32 %v675_v37, %v635_v44  ;;  %v638_v48 = vadd.f32 %v1076_v45, %v597_v34 }
 0x11d   :  { %v679_v49 = vadd.f32 %v678_v43, %v638_v48  ;;  %v682_v50 = vmax.f32 %v676_v47, 0.0 }
 0x11f   :  { %v683_v51 = vmax.f32 %v679_v49, 0.0 }
 0x121   :  { %v684_v52 = vpack.c.bf16 %v683_v51, %v682_v50 }
 0x123   :  { %1141 = vmatmul.mubr.bf16.vlgmr.msra.gmra.mrb[8].mxu0 %v684_v52 }
 0x1f6   :  { %v787_v57 = vpop.f32.mrb[8].mxu0 }
 0x1f7   :  { %v788_v58 = vadd.f32 %v787_v57, %v704_v56  ;;  %v1142_v59 = vpop.f32.mrb[9].mxu0 }
 0x1f8   :  { %v790_v60 = vpop.f32.mrb[10].mxu0 }
 0x1f9   :  { %v791_v61 = vadd.f32 %v790_v60, %v704_v56  ;;  %v1143_v62 = vpop.f32.mrb[11].mxu0  ;;  %v794_v63 = vmax.f32 %v788_v58, 0.0 }
 0x1fb   :  { %v795_v0 = vmax.f32 %v791_v61, 0.0 }
 0x1fd   :  { %v796_v1 = vpack.c.bf16 %v795_v0, %v794_v63 }
 0x1ff   :  { %1161 = vmatmul.mubr.bf16.vlgmr.msra.gmra.mrb[8].mxu1 %v796_v1 }
 0x2d2   :  { %v899_v38 = vpop.f32.mrb[8].mxu1 }
 0x2d3   :  { %v900_v4 = vadd.f32 %v899_v38, %v816_v3  ;;  %v1162_v5 = vpop.f32.mrb[9].mxu1 }
 0x2d4   :  { %v902_v6 = vpop.f32.mrb[10].mxu1 }
 0x2d5   :  { %906 = vmax.xlane.f32.xlu0 %v900_v4  ;;  %v1163_v7 = vpop.f32.mrb[11].mxu1  ;;  %v903_v8 = vadd.f32 %v902_v6, %v816_v3 }
 0x2d9   :  { %908 = vmax.xlane.f32.xlu0 %v903_v8 }
 0x362   :  { %v907_v9 = vpop.xlane.xlu0 %906 }
 0x363   :  { %v910_v10 = vsub.f32 %v900_v4, %v907_v9 }
 0x365   :  { %v912_v11 = vmul.f32 1.442695, %v910_v10 }
 0x366   :  { %v909_v12 = vpop.xlane.xlu0 %908 }
 0x367   :  { %v911_v13 = vsub.f32 %v903_v8, %v909_v12  ;;  %1248 = vpow2.f32 %v912_v11 }
 0x369   :  { %v914_v14 = vmul.f32 1.442695, %v911_v13 }
 0x36b   :  { %1250 = vpow2.f32 %v914_v14 }
 0x371   :  { %v1249_v16 = vpop.eup %1248 }
 0x372   :  { %916 = vadd.xlane.f32.xlu1 %v1249_v16 }
 0x375   :  { %v1251_v15 = vpop.eup %1250 }
 0x376   :  { %918 = vadd.xlane.f32.xlu1 %v1251_v15 }
 0x3ff   :  { %v917_v17 = vpop.xlane.xlu1 %916 }
 0x400   :  { %1252 = vlog2.f32 %v917_v17 }
 0x403   :  { %v919_v18 = vpop.xlane.xlu1 %918 }
 0x404   :  { %1254 = vlog2.f32 %v919_v18 }
 0x40a   :  { %v1253_v19 = vpop.eup %1252 }
 0x40b   :  { %v921_v20 = vmul.f32 0.6931472, %v1253_v19 }
 0x40d   :  { %v924_v21 = vsub.f32 %v910_v10, %v921_v20 }
 0x40e   :  { %v1255_v22 = vpop.eup %1254 }
 0x40f   :  { %926 = vst [vmem:[%s1569_s5] sm:$0xff] %v924_v21  ;;  %v923_v23 = vmul.f32 0.6931472, %v1255_v22 }
 0x411   :  { %v925_v24 = vsub.f32 %v911_v13, %v923_v23 }
 0x413   :  { %927 = vst [vmem:[%s1569_s5 + $0x8] sm:$0xff] %v925_v24 }

</bundles_post_ra>
